<compile_context>
chip_gen: v7x
topology: tpu7x:2x2x1
jax: 0.10.0
libtpu: 0.0.40
codegen_flags: <defaults>
</compile_context>

<pallas_src>
import functools

import jax
import jax.numpy as jnp
from jax.experimental import pallas as pl
from jax.experimental.pallas import tpu as pltpu

LANE = 128      # TPU vreg lane width
SUBLANE = 8     # TPU vreg sublane count
MIB = 1024 * 1024

# The PyTorch module takes the activation class as a ctor arg; support the
# common elementwise choices here (default ReLU).
_ACTIVATIONS = {
    "relu": lambda z: jnp.maximum(z, 0.0),
    "tanh": jnp.tanh,
    "gelu": jax.nn.gelu,
    "sigmoid": jax.nn.sigmoid,
}


def _round_up(x, m):
    return (x + m - 1) // m * m


def _cdiv(a, b):
    return (a + b - 1) // b


def _pad2d(a, rows, cols):
    r, c = a.shape
    if r == rows and c == cols:
        return a
    return jnp.pad(a, ((0, rows - r), (0, cols - c)))


def _divisor_tile(full, target, unit=LANE):
    """Largest multiple of `unit` that divides `full` and is <= target."""
    t = min(_round_up(target, unit), full)
    t = max((t // unit) * unit, unit)
    while t > unit and full % t != 0:
        t -= unit
    return t


def _vmem_budget_bytes():
    """Generation-aware usable-VMEM budget (per TensorCore)."""
    try:
        phys = int(pltpu.get_tpu_info().vmem_capacity_bytes)
    except Exception:
        try:
            kind = jax.devices()[0].device_kind.lower()
            phys = 64 * MIB if "v7" in kind else 128 * MIB
        except Exception:
            phys = 64 * MIB
    # Leave ~3/16 of physical VMEM for compiler-internal scratch / slack:
    #   128 MiB (v5e/v6e) -> 104 MiB usable;  64 MiB (v7x) -> 52 MiB usable.
    return (phys * 13) // 16


# --------------------------------------------------------------------------
# Kernels
# --------------------------------------------------------------------------
def _fused_mlp_kernel(*refs, num_layers, act, compute_dtype):
    # refs = (x_ref, w0, b0, w1, b1, ..., o_ref); weights stay VMEM-resident.
    x_ref, o_ref = refs[0], refs[-1]
    z = x_ref[...]
    for li in range(num_layers):
        w_ref = refs[1 + 2 * li]
        b_ref = refs[2 + 2 * li]
        z = jnp.dot(z.astype(compute_dtype), w_ref[...],
                    preferred_element_type=jnp.float32)
        z = z + b_ref[...].astype(jnp.float32)        # bias / epilogue in f32
        if li != num_layers - 1:
            z = act(z)
    o_ref[...] = z.astype(o_ref.dtype)


def _linear_tiled_kernel(x_ref, w_ref, b_ref, o_ref, acc_ref, *,
                         apply_act, act, compute_dtype):
    k = pl.program_id(2)

    @pl.when(k == 0)
    def _():
        acc_ref[...] = jnp.zeros_like(acc_ref)

    acc_ref[...] += jnp.dot(x_ref[...].astype(compute_dtype), w_ref[...],
                            preferred_element_type=jnp.float32)

    @pl.when(k == pl.num_programs(2) - 1)
    def _():
        z = acc_ref[...] + b_ref[...].astype(jnp.float32)
        if apply_act:
            z = act(z)
        o_ref[...] = z.astype(o_ref.dtype)


# --------------------------------------------------------------------------
# MLP wrapper (packs parameters once, picks fused vs. tiled path per call)
# --------------------------------------------------------------------------
class PallasMLP:
    """act(x @ W0 + b0) -> ... -> x @ W_last + b_last, on TPU via Pallas."""

    def __init__(self, params, input_dim, *, activation="relu",
                 compute_dtype=jnp.float32, block_rows=512):
        self.num_layers = len(params)
        self.act = _ACTIVATIONS[activation]
        self.compute_dtype = compute_dtype      # set to jnp.bfloat16 for MXU bf16 path
        self.block_rows = block_rows
        self.budget = _vmem_budget_bytes()

        self.dims = [int(input_dim)] + [int(w.shape[1]) for (w, _) in params]
        self.pdims = [_round_up(d, LANE) for d in self.dims]

        # One-time packing: lane-dense (128-multiple) padding, weights cast to
        # the compute dtype, biases kept f32 for the epilogue.
        self.packed = []
        for li, (w, b) in enumerate(params):
            w_p = _pad2d(jnp.asarray(w, compute_dtype),
                         self.pdims[li], self.pdims[li + 1])
            b_p = jnp.pad(jnp.asarray(b, jnp.float32),
                          (0, self.pdims[li + 1] - b.shape[0])).reshape(1, -1)
            self.packed.append((w_p, b_p))
        self.resident_bytes = sum(
            int(w_p.size) * w_p.dtype.itemsize + int(b_p.size) * b_p.dtype.itemsize
            for (w_p, b_p) in self.packed)

    # -- public forward ------------------------------------------------------
    def __call__(self, x, edge_index=None, edge_weight=None):
        # edge_index / edge_weight accepted but unused (as in the reference).
        block_n = self._fused_block_rows(x.shape[0], x.dtype.itemsize)
        if block_n is not None:
            for single_buffer in (True, False):
                try:
                    return self._forward_fused(x, block_n, single_buffer)
                except Exception:
                    continue   # safety net: retry double-buffered, then tiled
        return self._forward_tiled(x)

    # -- fused path ------------------------------------------------------------
    def _fused_block_rows(self, n, x_itemsize):
        pdims, budget = self.pdims, self.budget
        n_pad = _round_up(n, SUBLANE)
        cand = min(self.block_rows, n_pad)
        # v7x has 2 TensorCores: keep >= 2 "parallel" row tiles when the batch
        # is large enough so megacore sharding can kick in.
        if n > 2 * LANE and cand >= n_pad:
            cand = _round_up(_cdiv(n, 2), SUBLANE)
        cand = max(_round_up(cand, SUBLANE), SUBLANE)
        max_pd = max(pdims)
        while cand >= SUBLANE:
            est = (self.resident_bytes                       # single-buffered params
                   + 2 * cand * pdims[0] * x_itemsize        # double-buffered in tile
                   + 2 * cand * pdims[-1] * x_itemsize       # double-buffered out tile
                   + 2 * cand * max_pd * 4)                  # f32 intermediates
            if est + 4 * MIB <= budget:
                return cand
            if cand == SUBLANE:
                break
            cand = max(_round_up(cand // 2, SUBLANE), SUBLANE)
        return None

    def _forward_fused(self, x, block_n, single_buffer):
        n = x.shape[0]
        pdims = self.pdims
        out_dim, out_pad = self.dims[-1], pdims[-1]
        x_p = _pad2d(x, n, pdims[0])

        # Constant index_map => weights/biases stay VMEM-resident across row
        # tiles; Buffered(1) stops the pipeline from double-buffering them.
        wb_kwargs = {"pipeline_mode": pl.Buffered(1)} if single_buffer else {}
        in_specs = [pl.BlockSpec((block_n, pdims[0]), lambda i: (i, 0))]
        operands = [x_p]
        for li, (w_p, b_p) in enumerate(self.packed):
            di, do = pdims[li], pdims[li + 1]
            in_specs.append(pl.BlockSpec((di, do), lambda i: (0, 0), **wb_kwargs))
            in_specs.append(pl.BlockSpec((1, do), lambda i: (0, 0), **wb_kwargs))
            operands += [w_p, b_p]
        out_specs = pl.BlockSpec((block_n, out_pad), lambda i: (i, 0))

        mult = 1 if single_buffer else 2
        est = (mult * self.resident_bytes
               + 2 * block_n * pdims[0] * x.dtype.itemsize
               + 2 * block_n * out_pad * x.dtype.itemsize
               + 2 * block_n * max(pdims) * 4)
        vmem_limit = int(min(self.budget, max(est + 8 * MIB, 24 * MIB)))

        flops = 2 * n * sum(pdims[i] * pdims[i + 1] for i in range(self.num_layers))
        bytes_accessed = int(x_p.size * x_p.dtype.itemsize
                             + self.resident_bytes
                             + n * out_pad * x.dtype.itemsize)

        out = pl.pallas_call(
            functools.partial(_fused_mlp_kernel, num_layers=self.num_layers,
                              act=self.act, compute_dtype=self.compute_dtype),
            out_shape=jax.ShapeDtypeStruct((n, out_pad), x.dtype),
            grid_spec=pltpu.PrefetchScalarGridSpec(
                num_scalar_prefetch=0,
                grid=(_cdiv(n, block_n),),
                in_specs=in_specs,
                out_specs=out_specs,
            ),
            compiler_params=pltpu.CompilerParams(
                dimension_semantics=("parallel",),
                vmem_limit_bytes=vmem_limit,
            ),
            cost_estimate=pl.CostEstimate(
                flops=int(flops), transcendentals=0,
                bytes_accessed=bytes_accessed),
        )(*operands)
        return out[:, :out_dim]

    # -- large-layer fallback: per-layer (M, N, K)-tiled matmul ----------------
    def _forward_tiled(self, x):
        z = x
        for li in range(self.num_layers):
            z = self._linear_tiled(z, li, apply_act=(li != self.num_layers - 1))
        return z

    def _linear_tiled(self, x, li, apply_act, tm=512, tn=256, tk=1024):
        w_p, b_p = self.packed[li]
        n = x.shape[0]
        out_dim = self.dims[li + 1]
        k_full, c_full = int(w_p.shape[0]), int(w_p.shape[1])
        itemsize = w_p.dtype.itemsize

        tm = min(tm, _round_up(n, SUBLANE))
        tk = _divisor_tile(k_full, tk)       # must divide padded K (exact reduce)
        tn = _divisor_tile(c_full, tn)

        def footprint(tm_, tn_, tk_):
            return (2 * (tm_ * tk_ + tk_ * tn_ + tn_) * itemsize   # dbl-buffered in
                    + 2 * tm_ * tn_ * x.dtype.itemsize             # dbl-buffered out
                    + tm_ * tn_ * 4)                               # f32 accumulator

        while footprint(tm, tn, tk) + 4 * MIB > self.budget:
            if tk > LANE:
                tk = _divisor_tile(k_full, tk // 2)
            elif tm > SUBLANE:
                tm = max(_round_up(tm // 2, SUBLANE), SUBLANE)
            elif tn > LANE:
                tn = _divisor_tile(c_full, tn // 2)
            else:
                break

        x_p = _pad2d(x, n, k_full)           # zero-pad K -> exact reduction
        grid = (_cdiv(n, tm), c_full // tn, k_full // tk)

        flops = 2 * n * k_full * c_full
        # Count weight (and x) re-streaming, not a single pass.
        bytes_accessed = int(
            x_p.size * x_p.dtype.itemsize * (c_full // tn)
            + w_p.size * itemsize * _cdiv(n, tm)
            + b_p.size * b_p.dtype.itemsize * _cdiv(n, tm)
            + n * c_full * x.dtype.itemsize)

        vmem_limit = int(min(self.budget,
                             max(footprint(tm, tn, tk) + 8 * MIB, 24 * MIB)))

        out = pl.pallas_call(
            functools.partial(_linear_tiled_kernel, apply_act=apply_act,
                              act=self.act, compute_dtype=self.compute_dtype),
            out_shape=jax.ShapeDtypeStruct((n, c_full), x.dtype),
            grid_spec=pltpu.PrefetchScalarGridSpec(
                num_scalar_prefetch=0,
                grid=grid,
                in_specs=[
                    pl.BlockSpec((tm, tk), lambda i, j, k: (i, k)),
                    pl.BlockSpec((tk, tn), lambda i, j, k: (k, j)),
                    pl.BlockSpec((1, tn), lambda i, j, k: (0, j)),
                ],
                out_specs=pl.BlockSpec((tm, tn), lambda i, j, k: (i, j)),
                scratch_shapes=[pltpu.VMEM((tm, tn), jnp.float32)],
            ),
            compiler_params=pltpu.CompilerParams(
                dimension_semantics=("parallel", "parallel", "arbitrary"),
                vmem_limit_bytes=vmem_limit,
            ),
            cost_estimate=pl.CostEstimate(
                flops=int(flops), transcendentals=0,
                bytes_accessed=bytes_accessed),
        )(x_p, w_p, b_p)
        return out[:, :out_dim]


# --------------------------------------------------------------------------
# Params + reference
# --------------------------------------------------------------------------
def init_mlp_params(key, input_dim, hidden_dim, output_dim, num_layers,
                    dtype=jnp.float32):
    """nn.Linear-style init (uniform +-1/sqrt(fan_in)); weights stored (in, out)."""
    dims = [input_dim] + [hidden_dim] * (num_layers - 1) + [output_dim]
    params = []
    for li in range(num_layers):
        fan_in, fan_out = dims[li], dims[li + 1]
        key, kw, kb = jax.random.split(key, 3)
        bound = 1.0 / float(fan_in) ** 0.5
        w = jax.random.uniform(kw, (fan_in, fan_out), dtype, -bound, bound)
        b = jax.random.uniform(kb, (fan_out,), dtype, -bound, bound)
        params.append((w, b))
    return params


def _ref_forward(params, x):
    z = x
    for li, (w, b) in enumerate(params):
        z = jnp.dot(z, w, precision="highest") + b
        if li != len(params) - 1:
            z = jnp.maximum(z, 0.0)
    return z


if __name__ == "__main__":
    key = jax.random.PRNGKey(0)
    kx, kp, kx2, kp2, kx3, kw3, kb3 = jax.random.split(key, 7)

    # --- small module-sized test (matches the PyTorch MLP signature) --------
    N, input_dim, hidden_dim, output_dim, num_layers = 8, 16, 32, 8, 3
    x = jax.random.normal(kx, (N, input_dim), jnp.float32)
    params = init_mlp_params(kp, input_dim, hidden_dim, output_dim, num_layers)
    mlp = PallasMLP(params, input_dim, activation="relu")

    edge_index = jnp.zeros((2, 4), jnp.int32)     # unused by forward()
    edge_weight = jnp.ones((4,), jnp.float32)     # unused by forward()

    out = mlp(x, edge_index, edge_weight)
    jax.block_until_ready(out)
    ref = _ref_forward(params, x)
    assert out.shape == (N, output_dim)
    assert jnp.allclose(out, ref, atol=2e-4, rtol=2e-4)

    # --- moderate test: fused path with >=2 row tiles (resident weights) ----
    N2, d_in2, d_h2, d_out2 = 300, 64, 256, 32
    x2 = jax.random.normal(kx2, (N2, d_in2), jnp.float32)
    params2 = init_mlp_params(kp2, d_in2, d_h2, d_out2, 3)
    mlp2 = PallasMLP(params2, d_in2, activation="relu")
    out2 = mlp2(x2)
    jax.block_until_ready(out2)
    ref2 = _ref_forward(params2, x2)
    assert out2.shape == (N2, d_out2)
    assert jnp.allclose(out2, ref2, atol=2e-3, rtol=2e-3)

    # --- exercise the HBM-streaming tiled fallback path ----------------------
    out2_tiled = mlp2._forward_tiled(x2)
    jax.block_until_ready(out2_tiled)
    assert jnp.allclose(out2_tiled, ref2, atol=2e-3, rtol=2e-3)

    # Ragged / non-128 shapes through a single tiled layer.
    x3 = jax.random.normal(kx3, (130, 200), jnp.float32)
    w3 = jax.random.normal(kw3, (200, 72), jnp.float32) * 0.05
    b3 = jax.random.normal(kb3, (72,), jnp.float32)
    mlp3 = PallasMLP([(w3, b3)], 200, activation="relu")
    y3 = mlp3._linear_tiled(x3, 0, apply_act=True)
    jax.block_until_ready(y3)
    y3_ref = jnp.maximum(jnp.dot(x3, w3, precision="highest") + b3, 0.0)
    assert y3.shape == (130, 72)
    assert jnp.allclose(y3, y3_ref, atol=2e-4, rtol=2e-4)

    print("KERNEL_OK")
</pallas_src>

<mosaic_0001>
module attributes {stable_mosaic.version = 11 : i64} {
  func.func @_fused_mlp_kernel(%arg0: i32, %arg1: memref<8x128xf32, #tpu.memory_space<vmem>>, %arg2: memref<128x128xf32, #tpu.memory_space<vmem>>, %arg3: memref<1x128xf32, #tpu.memory_space<vmem>>, %arg4: memref<128x128xf32, #tpu.memory_space<vmem>>, %arg5: memref<1x128xf32, #tpu.memory_space<vmem>>, %arg6: memref<128x128xf32, #tpu.memory_space<vmem>>, %arg7: memref<1x128xf32, #tpu.memory_space<vmem>>, %arg8: memref<8x128xf32, #tpu.memory_space<vmem>>) attributes {dimension_semantics = [#tpu.dimension_semantics<parallel>], iteration_bounds = array<i64: 1>, scalar_prefetch = 0 : i64, scratch_operands = 0 : i64, tpu.core_type = #tpu.core_type<tc>, window_params = [{transform_indices = @transform_0, window_bounds = array<i64: 8, 128>}, {pipeline_mode = #tpu.pipeline_mode<synchronous>, transform_indices = @transform_1, window_bounds = array<i64: 128, 128>}, {pipeline_mode = #tpu.pipeline_mode<synchronous>, transform_indices = @transform_2, window_bounds = array<i64: 1, 128>}, {pipeline_mode = #tpu.pipeline_mode<synchronous>, transform_indices = @transform_3, window_bounds = array<i64: 128, 128>}, {pipeline_mode = #tpu.pipeline_mode<synchronous>, transform_indices = @transform_4, window_bounds = array<i64: 1, 128>}, {pipeline_mode = #tpu.pipeline_mode<synchronous>, transform_indices = @transform_5, window_bounds = array<i64: 128, 128>}, {pipeline_mode = #tpu.pipeline_mode<synchronous>, transform_indices = @transform_6, window_bounds = array<i64: 1, 128>}, {transform_indices = @transform_7, window_bounds = array<i64: 8, 128>}]} {
    %c0 = arith.constant 0 : index
    %c0_0 = arith.constant 0 : index
    %0 = vector.load %arg1[%c0, %c0_0] : memref<8x128xf32, #tpu.memory_space<vmem>>, vector<8x128xf32>
    %c0_1 = arith.constant 0 : index
    %c0_2 = arith.constant 0 : index
    %1 = vector.load %arg2[%c0_1, %c0_2] : memref<128x128xf32, #tpu.memory_space<vmem>>, vector<128x128xf32>
    %cst = arith.constant dense<0.000000e+00> : vector<8x128xf32>
    %2 = tpu.matmul %0, %1, %cst {dimension_numbers = #tpu.dot_dimension_numbers<[1], [0], [0], [1], [0, 0, 1, 1], [], []>} : vector<8x128xf32>, vector<128x128xf32>, vector<8x128xf32> -> vector<8x128xf32>
    %c0_3 = arith.constant 0 : index
    %c0_4 = arith.constant 0 : index
    %3 = vector.load %arg3[%c0_3, %c0_4] : memref<1x128xf32, #tpu.memory_space<vmem>>, vector<1x128xf32>
    %4 = vector.broadcast %3 : vector<1x128xf32> to vector<8x128xf32>
    %5 = arith.addf %2, %4 : vector<8x128xf32>
    %cst_5 = arith.constant 0.000000e+00 : f32
    %6 = vector.broadcast %cst_5 : f32 to vector<8x128xf32>
    %7 = arith.maximumf %5, %6 : vector<8x128xf32>
    %c0_6 = arith.constant 0 : index
    %c0_7 = arith.constant 0 : index
    %8 = vector.load %arg4[%c0_6, %c0_7] : memref<128x128xf32, #tpu.memory_space<vmem>>, vector<128x128xf32>
    %cst_8 = arith.constant dense<0.000000e+00> : vector<8x128xf32>
    %9 = tpu.matmul %7, %8, %cst_8 {dimension_numbers = #tpu.dot_dimension_numbers<[1], [0], [0], [1], [0, 0, 1, 1], [], []>} : vector<8x128xf32>, vector<128x128xf32>, vector<8x128xf32> -> vector<8x128xf32>
    %c0_9 = arith.constant 0 : index
    %c0_10 = arith.constant 0 : index
    %10 = vector.load %arg5[%c0_9, %c0_10] : memref<1x128xf32, #tpu.memory_space<vmem>>, vector<1x128xf32>
    %11 = vector.broadcast %10 : vector<1x128xf32> to vector<8x128xf32>
    %12 = arith.addf %9, %11 : vector<8x128xf32>
    %cst_11 = arith.constant 0.000000e+00 : f32
    %13 = vector.broadcast %cst_11 : f32 to vector<8x128xf32>
    %14 = arith.maximumf %12, %13 : vector<8x128xf32>
    %c0_12 = arith.constant 0 : index
    %c0_13 = arith.constant 0 : index
    %15 = vector.load %arg6[%c0_12, %c0_13] : memref<128x128xf32, #tpu.memory_space<vmem>>, vector<128x128xf32>
    %cst_14 = arith.constant dense<0.000000e+00> : vector<8x128xf32>
    %16 = tpu.matmul %14, %15, %cst_14 {dimension_numbers = #tpu.dot_dimension_numbers<[1], [0], [0], [1], [0, 0, 1, 1], [], []>} : vector<8x128xf32>, vector<128x128xf32>, vector<8x128xf32> -> vector<8x128xf32>
    %c0_15 = arith.constant 0 : index
    %c0_16 = arith.constant 0 : index
    %17 = vector.load %arg7[%c0_15, %c0_16] : memref<1x128xf32, #tpu.memory_space<vmem>>, vector<1x128xf32>
    %18 = vector.broadcast %17 : vector<1x128xf32> to vector<8x128xf32>
    %19 = arith.addf %16, %18 : vector<8x128xf32>
    %c0_17 = arith.constant 0 : index
    %c0_18 = arith.constant 0 : index
    %20 = vector.load %arg8[%c0_17, %c0_18] : memref<8x128xf32, #tpu.memory_space<vmem>>, vector<8x128xf32>
    tpu.vector_store %arg8[%c0_17, %c0_18], %19 {strides = array<i32>} : memref<8x128xf32, #tpu.memory_space<vmem>>, vector<8x128xf32>,
    return
  }
  func.func @transform_0(%arg0: i32) -> (i32, i32) {
    %c0_i32 = arith.constant 0 : i32
    %c0_i32_0 = arith.constant 0 : i32
    return %arg0, %c0_i32 : i32, i32
  }
  func.func @transform_1(%arg0: i32) -> (i32, i32) {
    %c0_i32 = arith.constant 0 : i32
    %c0_i32_0 = arith.constant 0 : i32
    %c0_i32_1 = arith.constant 0 : i32
    return %c0_i32, %c0_i32_0 : i32, i32
  }
  func.func @transform_2(%arg0: i32) -> (i32, i32) {
    %c0_i32 = arith.constant 0 : i32
    %c0_i32_0 = arith.constant 0 : i32
    %c0_i32_1 = arith.constant 0 : i32
    return %c0_i32, %c0_i32_0 : i32, i32
  }
  func.func @transform_3(%arg0: i32) -> (i32, i32) {
    %c0_i32 = arith.constant 0 : i32
    %c0_i32_0 = arith.constant 0 : i32
    %c0_i32_1 = arith.constant 0 : i32
    return %c0_i32, %c0_i32_0 : i32, i32
  }
  func.func @transform_4(%arg0: i32) -> (i32, i32) {
    %c0_i32 = arith.constant 0 : i32
    %c0_i32_0 = arith.constant 0 : i32
    %c0_i32_1 = arith.constant 0 : i32
    return %c0_i32, %c0_i32_0 : i32, i32
  }
  func.func @transform_5(%arg0: i32) -> (i32, i32) {
    %c0_i32 = arith.constant 0 : i32
    %c0_i32_0 = arith.constant 0 : i32
    %c0_i32_1 = arith.constant 0 : i32
    return %c0_i32, %c0_i32_0 : i32, i32
  }
  func.func @transform_6(%arg0: i32) -> (i32, i32) {
    %c0_i32 = arith.constant 0 : i32
    %c0_i32_0 = arith.constant 0 : i32
    %c0_i32_1 = arith.constant 0 : i32
    return %c0_i32, %c0_i32_0 : i32, i32
  }
  func.func @transform_7(%arg0: i32) -> (i32, i32) {
    %c0_i32 = arith.constant 0 : i32
    %c0_i32_0 = arith.constant 0 : i32
    return %arg0, %c0_i32 : i32, i32
  }
}

module attributes {stable_mosaic.version = 11 : i64} {
  func.func @_fused_mlp_kernel(%arg0: i32, %arg1: memref<8x128xf32, #tpu.memory_space<vmem>>, %arg2: memref<128x128xf32, #tpu.memory_space<vmem>>, %arg3: memref<1x128xf32, #tpu.memory_space<vmem>>, %arg4: memref<128x128xf32, #tpu.memory_space<vmem>>, %arg5: memref<1x128xf32, #tpu.memory_space<vmem>>, %arg6: memref<128x128xf32, #tpu.memory_space<vmem>>, %arg7: memref<1x128xf32, #tpu.memory_space<vmem>>, %arg8: memref<8x128xf32, #tpu.memory_space<vmem>>) attributes {dimension_semantics = [#tpu.dimension_semantics<parallel>], iteration_bounds = array<i64: 1>, scalar_prefetch = 0 : i64, scratch_operands = 0 : i64, tpu.core_type = #tpu.core_type<tc>, window_params = [{transform_indices = @transform_0, window_bounds = array<i64: 8, 128>}, {pipeline_mode = #tpu.pipeline_mode<synchronous>, transform_indices = @transform_1, window_bounds = array<i64: 128, 128>}, {pipeline_mode = #tpu.pipeline_mode<synchronous>, transform_indices = @transform_2, window_bounds = array<i64: 1, 128>}, {pipeline_mode = #tpu.pipeline_mode<synchronous>, transform_indices = @transform_3, window_bounds = array<i64: 128, 128>}, {pipeline_mode = #tpu.pipeline_mode<synchronous>, transform_indices = @transform_4, window_bounds = array<i64: 1, 128>}, {pipeline_mode = #tpu.pipeline_mode<synchronous>, transform_indices = @transform_5, window_bounds = array<i64: 128, 128>}, {pipeline_mode = #tpu.pipeline_mode<synchronous>, transform_indices = @transform_6, window_bounds = array<i64: 1, 128>}, {transform_indices = @transform_7, window_bounds = array<i64: 8, 128>}]} {
    %c0 = arith.constant 0 : index
    %c0_0 = arith.constant 0 : index
    %0 = vector.load %arg1[%c0, %c0_0] : memref<8x128xf32, #tpu.memory_space<vmem>>, vector<8x128xf32>
    %c0_1 = arith.constant 0 : index
    %c0_2 = arith.constant 0 : index
    %1 = vector.load %arg2[%c0_1, %c0_2] : memref<128x128xf32, #tpu.memory_space<vmem>>, vector<128x128xf32>
    %cst = arith.constant dense<0.000000e+00> : vector<8x128xf32>
    %2 = tpu.matmul %0, %1, %cst {dimension_numbers = #tpu.dot_dimension_numbers<[1], [0], [0], [1], [0, 0, 1, 1], [], []>} : vector<8x128xf32>, vector<128x128xf32>, vector<8x128xf32> -> vector<8x128xf32>
    %c0_3 = arith.constant 0 : index
    %c0_4 = arith.constant 0 : index
    %3 = vector.load %arg3[%c0_3, %c0_4] : memref<1x128xf32, #tpu.memory_space<vmem>>, vector<1x128xf32>
    %4 = vector.broadcast %3 : vector<1x128xf32> to vector<8x128xf32>
    %5 = arith.addf %2, %4 : vector<8x128xf32>
    %cst_5 = arith.constant 0.000000e+00 : f32
    %6 = vector.broadcast %cst_5 : f32 to vector<8x128xf32>
    %7 = arith.maximumf %5, %6 : vector<8x128xf32>
    %c0_6 = arith.constant 0 : index
    %c0_7 = arith.constant 0 : index
    %8 = vector.load %arg4[%c0_6, %c0_7] : memref<128x128xf32, #tpu.memory_space<vmem>>, vector<128x128xf32>
    %cst_8 = arith.constant dense<0.000000e+00> : vector<8x128xf32>
    %9 = tpu.matmul %7, %8, %cst_8 {dimension_numbers = #tpu.dot_dimension_numbers<[1], [0], [0], [1], [0, 0, 1, 1], [], []>} : vector<8x128xf32>, vector<128x128xf32>, vector<8x128xf32> -> vector<8x128xf32>
    %c0_9 = arith.constant 0 : index
    %c0_10 = arith.constant 0 : index
    %10 = vector.load %arg5[%c0_9, %c0_10] : memref<1x128xf32, #tpu.memory_space<vmem>>, vector<1x128xf32>
    %11 = vector.broadcast %10 : vector<1x128xf32> to vector<8x128xf32>
    %12 = arith.addf %9, %11 : vector<8x128xf32>
    %cst_11 = arith.constant 0.000000e+00 : f32
    %13 = vector.broadcast %cst_11 : f32 to vector<8x128xf32>
    %14 = arith.maximumf %12, %13 : vector<8x128xf32>
    %c0_12 = arith.constant 0 : index
    %c0_13 = arith.constant 0 : index
    %15 = vector.load %arg6[%c0_12, %c0_13] : memref<128x128xf32, #tpu.memory_space<vmem>>, vector<128x128xf32>
    %cst_14 = arith.constant dense<0.000000e+00> : vector<8x128xf32>
    %16 = tpu.matmul %14, %15, %cst_14 {dimension_numbers = #tpu.dot_dimension_numbers<[1], [0], [0], [1], [0, 0, 1, 1], [], []>} : vector<8x128xf32>, vector<128x128xf32>, vector<8x128xf32> -> vector<8x128xf32>
    %c0_15 = arith.constant 0 : index
    %c0_16 = arith.constant 0 : index
    %17 = vector.load %arg7[%c0_15, %c0_16] : memref<1x128xf32, #tpu.memory_space<vmem>>, vector<1x128xf32>
    %18 = vector.broadcast %17 : vector<1x128xf32> to vector<8x128xf32>
    %19 = arith.addf %16, %18 : vector<8x128xf32>
    %c0_17 = arith.constant 0 : index
    %c0_18 = arith.constant 0 : index
    %20 = vector.load %arg8[%c0_17, %c0_18] : memref<8x128xf32, #tpu.memory_space<vmem>>, vector<8x128xf32>
    tpu.vector_store %arg8[%c0_17, %c0_18], %19 {strides = array<i32>} : memref<8x128xf32, #tpu.memory_space<vmem>>, vector<8x128xf32>,
    return
  }
  func.func @transform_0(%arg0: i32) -> (i32, i32) {
    %c0_i32 = arith.constant 0 : i32
    %c0_i32_0 = arith.constant 0 : i32
    return %arg0, %c0_i32 : i32, i32
  }
  func.func @transform_1(%arg0: i32) -> (i32, i32) {
    %c0_i32 = arith.constant 0 : i32
    %c0_i32_0 = arith.constant 0 : i32
    %c0_i32_1 = arith.constant 0 : i32
    return %c0_i32, %c0_i32_0 : i32, i32
  }
  func.func @transform_2(%arg0: i32) -> (i32, i32) {
    %c0_i32 = arith.constant 0 : i32
    %c0_i32_0 = arith.constant 0 : i32
    %c0_i32_1 = arith.constant 0 : i32
    return %c0_i32, %c0_i32_0 : i32, i32
  }
  func.func @transform_3(%arg0: i32) -> (i32, i32) {
    %c0_i32 = arith.constant 0 : i32
    %c0_i32_0 = arith.constant 0 : i32
    %c0_i32_1 = arith.constant 0 : i32
    return %c0_i32, %c0_i32_0 : i32, i32
  }
  func.func @transform_4(%arg0: i32) -> (i32, i32) {
    %c0_i32 = arith.constant 0 : i32
    %c0_i32_0 = arith.constant 0 : i32
    %c0_i32_1 = arith.constant 0 : i32
    return %c0_i32, %c0_i32_0 : i32, i32
  }
  func.func @transform_5(%arg0: i32) -> (i32, i32) {
    %c0_i32 = arith.constant 0 : i32
    %c0_i32_0 = arith.constant 0 : i32
    %c0_i32_1 = arith.constant 0 : i32
    return %c0_i32, %c0_i32_0 : i32, i32
  }
  func.func @transform_6(%arg0: i32) -> (i32, i32) {
    %c0_i32 = arith.constant 0 : i32
    %c0_i32_0 = arith.constant 0 : i32
    %c0_i32_1 = arith.constant 0 : i32
    return %c0_i32, %c0_i32_0 : i32, i32
  }
  func.func @transform_7(%arg0: i32) -> (i32, i32) {
    %c0_i32 = arith.constant 0 : i32
    %c0_i32_0 = arith.constant 0 : i32
    return %arg0, %c0_i32 : i32, i32
  }
}

module attributes {stable_mosaic.version = 11 : i64} {
  func.func @_linear_tiled_kernel(%arg0: i32, %arg1: i32, %arg2: i32, %arg3: memref<8x128xf32, #tpu.memory_space<vmem>>, %arg4: memref<128x128xf32, #tpu.memory_space<vmem>>, %arg5: memref<1x128xf32, #tpu.memory_space<vmem>>, %arg6: memref<8x128xf32, #tpu.memory_space<vmem>>, %arg7: memref<8x128xf32, #tpu.memory_space<vmem>>) attributes {dimension_semantics = [#tpu.dimension_semantics<parallel>, #tpu.dimension_semantics<parallel>, #tpu.dimension_semantics<arbitrary>], iteration_bounds = array<i64: 1, 1, 1>, scalar_prefetch = 0 : i64, scratch_operands = 1 : i64, tpu.core_type = #tpu.core_type<tc>, window_params = [{transform_indices = @transform_0, window_bounds = array<i64: 8, 128>}, {transform_indices = @transform_1, window_bounds = array<i64: 128, 128>}, {transform_indices = @transform_2, window_bounds = array<i64: 1, 128>}, {transform_indices = @transform_3, window_bounds = array<i64: 8, 128>}]} {
    %c0_i32 = arith.constant 0 : i32
    %0 = arith.cmpi eq, %arg2, %c0_i32 : i32
    %1 = arith.extui %0 : i1 to i32
    %c0_i32_0 = arith.constant 0 : i32
    %2 = arith.cmpi ne, %1, %c0_i32_0 : i32
    scf.if %2 {
      %cst_10 = arith.constant 0.000000e+00 : f32
      %12 = vector.broadcast %cst_10 : f32 to vector<8x128xf32>
      %c0_11 = arith.constant 0 : index
      %c0_12 = arith.constant 0 : index
      %13 = vector.load %arg7[%c0_11, %c0_12] : memref<8x128xf32, #tpu.memory_space<vmem>>, vector<8x128xf32>
      tpu.vector_store %arg7[%c0_11, %c0_12], %12 {strides = array<i32>} : memref<8x128xf32, #tpu.memory_space<vmem>>, vector<8x128xf32>,
    } else {
    }
    %c0 = arith.constant 0 : index
    %c0_1 = arith.constant 0 : index
    %3 = vector.load %arg7[%c0, %c0_1] : memref<8x128xf32, #tpu.memory_space<vmem>>, vector<8x128xf32>
    %c0_2 = arith.constant 0 : index
    %c0_3 = arith.constant 0 : index
    %4 = vector.load %arg3[%c0_2, %c0_3] : memref<8x128xf32, #tpu.memory_space<vmem>>, vector<8x128xf32>
    %c0_4 = arith.constant 0 : index
    %c0_5 = arith.constant 0 : index
    %5 = vector.load %arg4[%c0_4, %c0_5] : memref<128x128xf32, #tpu.memory_space<vmem>>, vector<128x128xf32>
    %cst = arith.constant dense<0.000000e+00> : vector<8x128xf32>
    %6 = tpu.matmul %4, %5, %cst {dimension_numbers = #tpu.dot_dimension_numbers<[1], [0], [0], [1], [0, 0, 1, 1], [], []>} : vector<8x128xf32>, vector<128x128xf32>, vector<8x128xf32> -> vector<8x128xf32>
    %7 = arith.addf %3, %6 : vector<8x128xf32>
    %c0_6 = arith.constant 0 : index
    %c0_7 = arith.constant 0 : index
    %8 = vector.load %arg7[%c0_6, %c0_7] : memref<8x128xf32, #tpu.memory_space<vmem>>, vector<8x128xf32>
    tpu.vector_store %arg7[%c0_6, %c0_7], %7 {strides = array<i32>} : memref<8x128xf32, #tpu.memory_space<vmem>>, vector<8x128xf32>,
    %c0_i32_8 = arith.constant 0 : i32
    %9 = arith.cmpi eq, %arg2, %c0_i32_8 : i32
    %10 = arith.extui %9 : i1 to i32
    %c0_i32_9 = arith.constant 0 : i32
    %11 = arith.cmpi ne, %10, %c0_i32_9 : i32
    scf.if %11 {
      %c0_10 = arith.constant 0 : index
      %c0_11 = arith.constant 0 : index
      %12 = vector.load %arg7[%c0_10, %c0_11] : memref<8x128xf32, #tpu.memory_space<vmem>>, vector<8x128xf32>
      %c0_12 = arith.constant 0 : index
      %c0_13 = arith.constant 0 : index
      %13 = vector.load %arg5[%c0_12, %c0_13] : memref<1x128xf32, #tpu.memory_space<vmem>>, vector<1x128xf32>
      %14 = vector.broadcast %13 : vector<1x128xf32> to vector<8x128xf32>
      %15 = arith.addf %12, %14 : vector<8x128xf32>
      %cst_14 = arith.constant 0.000000e+00 : f32
      %16 = vector.broadcast %cst_14 : f32 to vector<8x128xf32>
      %17 = arith.maximumf %15, %16 : vector<8x128xf32>
      %c0_15 = arith.constant 0 : index
      %c0_16 = arith.constant 0 : index
      %18 = vector.load %arg6[%c0_15, %c0_16] : memref<8x128xf32, #tpu.memory_space<vmem>>, vector<8x128xf32>
      tpu.vector_store %arg6[%c0_15, %c0_16], %17 {strides = array<i32>} : memref<8x128xf32, #tpu.memory_space<vmem>>, vector<8x128xf32>,
    } else {
    }
    return
  }
  func.func @transform_0(%arg0: i32, %arg1: i32, %arg2: i32) -> (i32, i32) {
    %c0_i32 = arith.constant 0 : i32
    return %arg0, %arg2 : i32, i32
  }
  func.func @transform_1(%arg0: i32, %arg1: i32, %arg2: i32) -> (i32, i32) {
    %c0_i32 = arith.constant 0 : i32
    return %arg2, %arg1 : i32, i32
  }
  func.func @transform_2(%arg0: i32, %arg1: i32, %arg2: i32) -> (i32, i32) {
    %c0_i32 = arith.constant 0 : i32
    %c0_i32_0 = arith.constant 0 : i32
    return %c0_i32, %arg1 : i32, i32
  }
  func.func @transform_3(%arg0: i32, %arg1: i32, %arg2: i32) -> (i32, i32) {
    %c0_i32 = arith.constant 0 : i32
    return %arg0, %arg1 : i32, i32
  }
}

</mosaic_0001>

<bundles_post_ra>
// kernel: tpu_custom_call.1
= control target key start
LH: loop header
LB: loop body
LE: loop exit
PB: predicated region body
PF: predicated region fallthrough
CT: control target
= control target key end

     0   :  { %12 = vsyncpa [#allocation3], 0  ;;  %s897_s0 = inlined_call_operand.hbm [shape: f32[8,128], index: 0, kind: input, shape index: {}]   ;;  %s898_s1 = inlined_call_operand.hbm [shape: f32[128,128], index: 1, kind: input, shape index: {}]   ;;  %s899_s2 = inlined_call_operand.vmem [shape: f32[1,128], index: 2, kind: input, shape index: {}]   ;;  %s900_s3 = inlined_call_operand.hbm [shape: f32[128,128], index: 3, kind: input, shape index: {}]   ;;  %s901_s4 = inlined_call_operand.vmem [shape: f32[1,128], index: 4, kind: input, shape index: {}]   ;;  %s902_s5 = inlined_call_operand.hbm [shape: f32[128,128], index: 5, kind: input, shape index: {}]   ;;  %s903_s6 = inlined_call_operand.vmem [shape: f32[1,128], index: 6, kind: input, shape index: {}]   ;;  %s904_s7 = inlined_call_operand.hbm [shape: f32[8,128], index: 7, kind: output, shape index: {}]  }
   0x1   :  { %13 = vsyncpa [#allocation6], 0 }
   0x2   :  { %14 = vsyncpa [#allocation9], 0 }
   0x3   :  { %15 = vsyncpa [#allocation4], 0  ;;  %s739_s24 = smov [#allocation5]   ;;  %s621_s28 = scalar_lea.hbm %s898_s1, 2048 }
   0x4   :  { %s31_s25 = sshll.u32 %s739_s24, 4  ;;  %p622_p0 = scmp.ne.s32.totalorder %s898_s1, %s621_s28  ;;  %s32_s25 = int_to_ptr.vmem [resolvable:$true] %s31_s25 }
   0x5   :  { %p625_p1 = scmp.lt.u32.totalorder %s621_s28, %s898_s1 }
   0x7   :  { %p627_p2 = pnand %p625_p1, %p622_p0 }
   0x9   :  { %630 = shalt.err (!%p627_p2)
}
   0xa   :  { %s631_s10 = scalar_lea.vmem %s32_s25, 2048  ;;  %p636_p4 = scmp.lt.s32.totalorder %s32_s25, %s32_s25 }
   0xb   :  { %p632_p3 = scmp.ne.s32.totalorder %s32_s25, %s631_s10  ;;  %p637_p5 = scmp.lt.s32.totalorder %s631_s10, %s631_s10 }
   0xd   :  { %p638_p6 = por %p637_p5, %p636_p4 }
   0xf   :  { %p639_p7 = pnand %p638_p6, %p632_p3 }
  0x11   :  { %642 = shalt.err (!%p639_p7)
}
  0x12   :  { %s740_s11 = smov 128   ;;  %s741_s12 = smov 8  }
  0x13   :  { %37 = dma.hbm_to_vmem [thread:$0]  %s898_s1, 2048, %s32_s25, [#allocation6], %s740_s11, %s740_s11, %s741_s12  }
  0x14   :  { %s742_s15 = smov [#allocation2]   ;;  %s743_s17 = smov [#allocation7]  }
  0x15   :  { %s22_s16 = sshll.u32 %s742_s15, 4  ;;  %s45_s18 = sshll.u32 %s743_s17, 4  ;;  %s23_s16 = int_to_ptr.vmem [resolvable:$true] %s22_s16  ;;  %s46_s18 = int_to_ptr.vmem [resolvable:$true] %s45_s18 }
  0x16   :  { %s643_s21 = scalar_lea.hbm %s897_s0, 128 }
  0x17   :  { %p644_p8 = scmp.ne.s32.totalorder %s897_s0, %s643_s21  ;;  %p647_p9 = scmp.lt.u32.totalorder %s643_s21, %s897_s0 }
  0x19   :  { %p649_p10 = pnand %p647_p9, %p644_p8 }
  0x1b   :  { %652 = shalt.err (!%p649_p10)
}
  0x1c   :  { %s653_s1 = scalar_lea.vmem %s23_s16, 128  ;;  %p658_p12 = scmp.lt.s32.totalorder %s23_s16, %s23_s16 }
  0x1d   :  { %p654_p11 = scmp.ne.s32.totalorder %s23_s16, %s653_s1  ;;  %p659_p13 = scmp.lt.s32.totalorder %s653_s1, %s653_s1 }
  0x1f   :  { %p660_p0 = por %p659_p13, %p658_p12 }
  0x21   :  { %p661_p1 = pnand %p660_p0, %p654_p11 }
  0x23   :  { %664 = shalt.err (!%p661_p1)
}
  0x24   :  { %25 = dma.hbm_to_vmem [thread:$0]  %s897_s0, 128, %s23_s16, [#allocation3]  }
  0x25   :  { %s665_s30 = scalar_lea.hbm %s900_s3, 2048 }
  0x26   :  { %p666_p2 = scmp.ne.s32.totalorder %s900_s3, %s665_s30  ;;  %p669_p3 = scmp.lt.u32.totalorder %s665_s30, %s900_s3 }
  0x28   :  { %p671_p4 = pnand %p669_p3, %p666_p2 }
  0x2a   :  { %674 = shalt.err (!%p671_p4)
}
  0x2b   :  { %s675_s14 = scalar_lea.vmem %s46_s18, 2048  ;;  %p680_p6 = scmp.lt.s32.totalorder %s46_s18, %s46_s18 }
  0x2c   :  { %p676_p5 = scmp.ne.s32.totalorder %s46_s18, %s675_s14  ;;  %p681_p7 = scmp.lt.s32.totalorder %s675_s14, %s675_s14 }
  0x2e   :  { %p682_p8 = por %p681_p7, %p680_p6 }
  0x30   :  { %p683_p9 = pnand %p682_p8, %p676_p5 }
  0x32   :  { %686 = shalt.err (!%p683_p9)
}
  0x33   :  { %51 = dma.hbm_to_vmem [thread:$0]  %s900_s3, 2048, %s46_s18, [#allocation6], %s740_s11, %s740_s11, %s741_s12  }
  0x34   :  { %s744_s16 = smov [#allocation8]   ;;  %s687_s21 = scalar_lea.hbm %s902_s5, 2048 }
  0x35   :  { %s59_s17 = sshll.u32 %s744_s16, 4  ;;  %p688_p10 = scmp.ne.s32.totalorder %s902_s5, %s687_s21  ;;  %s60_s17 = int_to_ptr.vmem [resolvable:$true] %s59_s17 }
  0x36   :  { %p691_p11 = scmp.lt.u32.totalorder %s687_s21, %s902_s5 }
  0x38   :  { %p693_p12 = pnand %p691_p11, %p688_p10 }
  0x3a   :  { %696 = shalt.err (!%p693_p12)
}
  0x3b   :  { %s697_s1 = scalar_lea.vmem %s60_s17, 2048  ;;  %p702_p0 = scmp.lt.s32.totalorder %s60_s17, %s60_s17 }
  0x3c   :  { %p698_p13 = scmp.ne.s32.totalorder %s60_s17, %s697_s1  ;;  %p703_p1 = scmp.lt.s32.totalorder %s697_s1, %s697_s1 }
  0x3e   :  { %p704_p2 = por %p703_p1, %p702_p0 }
  0x40   :  { %p705_p3 = pnand %p704_p2, %p698_p13 }
  0x42   :  { %708 = shalt.err (!%p705_p3)
}
  0x43   :  { %65 = dma.hbm_to_vmem [thread:$0]  %s902_s5, 2048, %s60_s17, [#allocation9], %s740_s11, %s740_s11, %s741_s12  }
  0x44   :  { %731 = dma.done.wait [#allocation3], 128  }
  0x45   :  { %732 = vsyncadd [#allocation3], 4294967168 }
  0x46   :  { %733 = dma.done.wait [#allocation6], 4096  }
  0x47   :  { %734 = vsyncadd [#allocation6], 4294963200 }
  0x48   :  { %735 = dma.done.wait [#allocation9], 2048  }
  0x49   :  { %736 = vsyncadd [#allocation9], 4294965248  ;;  %v745_v0 = vmov 0.0|0.0   ;;  %vm746_vm0 = vmmov 0   ;;  %v747_v1 = vmov 0.0   ;;  %v81_v2 = vld [vmem:[#allocation5] sm:$0xff] }
  0x4a   :  { %539 = vmatprep.subr.bf16.mxu0 %v745_v0  ;;  %466 = vmatprep.mubr.msk.f32.mxu0 %vm746_vm0, %v747_v1  ;;  %v82_v3 = vld [vmem:[#allocation5 + $0x8] sm:$0xff]  ;;  %v83_v4 = vld [vmem:[#allocation5 + $0x10] sm:$0xff]  ;;  %v84_v6 = vld [vmem:[#allocation5 + $0x18] sm:$0xff]  ;;  %s748_s28 = smov [#allocation10]  }
  0x4b   :  { %563 = vmatprep.subr.bf16.mxu1 %v745_v0  ;;  %501 = vmatprep.mubr.msk.f32.mxu1 %vm746_vm0, %v747_v1  ;;  %v540_v5 = vpack.c.bf16 %v82_v3, %v81_v2  ;;  %v543_v7 = vpack.c.bf16 %v84_v6, %v83_v4  ;;  %v85_v8 = vld [vmem:[#allocation5 + $0x20] sm:$0xff]  ;;  %v86_v9 = vld [vmem:[#allocation5 + $0x28] sm:$0xff]  ;;  %v177_v12 = vld [vmem:[#allocation7 + $0x10] sm:$0xff]  ;;  %s369_s29 = sshll.u32 %s748_s28, 4  ;;  %s370_s29 = int_to_ptr.vmem [resolvable:$true] %s369_s29 }
  0x4c   :  { %v175_v10 = vld [vmem:[#allocation7] sm:$0xff]  ;;  %v176_v11 = vld [vmem:[#allocation7 + $0x8] sm:$0xff]  ;;  %v178_v13 = vld [vmem:[#allocation7 + $0x18] sm:$0xff]  ;;  %v546_v14 = vpack.c.bf16 %v86_v9, %v85_v8  ;;  %s709_s30 = scalar_lea.vmem %s370_s29, 128  ;;  %p714_p5 = scmp.lt.s32.totalorder %s370_s29, %s370_s29 }
  0x4d   :  { %541 = vmatpush3.bf16.msra.mxu0 %v540_v5  ;;  %v564_v15 = vpack.c.bf16 %v176_v11, %v175_v10  ;;  %v87_v16 = vld [vmem:[#allocation5 + $0x30] sm:$0xff]  ;;  %v88_v17 = vld [vmem:[#allocation5 + $0x38] sm:$0xff]  ;;  %v567_v18 = vpack.c.bf16 %v178_v13, %v177_v12  ;;  %v179_v19 = vld [vmem:[#allocation7 + $0x20] sm:$0xff]  ;;  %p710_p4 = scmp.ne.s32.totalorder %s370_s29, %s709_s30  ;;  %p715_p6 = scmp.lt.s32.totalorder %s709_s30, %s709_s30 }
  0x4e   :  { %542 = vmatprep.subr.bf16.mxu0 %v745_v0  ;;  %v180_v20 = vld [vmem:[#allocation7 + $0x28] sm:$0xff]  ;;  %v549_v21 = vpack.c.bf16 %v88_v17, %v87_v16  ;;  %v89_v22 = vld [vmem:[#allocation5 + $0x40] sm:$0xff]  ;;  %v181_v25 = vld [vmem:[#allocation7 + $0x30] sm:$0xff] }
  0x4f   :  { %565 = vmatpush3.bf16.msra.mxu1 %v564_v15  ;;  %v90_v23 = vld [vmem:[#allocation5 + $0x48] sm:$0xff]  ;;  %v570_v24 = vpack.c.bf16 %v180_v20, %v179_v19  ;;  %v182_v26 = vld [vmem:[#allocation7 + $0x38] sm:$0xff]  ;;  %v91_v28 = vld [vmem:[#allocation5 + $0x50] sm:$0xff]  ;;  %p716_p7 = por %p715_p6, %p714_p5 }
  0x50   :  { %566 = vmatprep.subr.bf16.mxu1 %v745_v0  ;;  %v552_v27 = vpack.c.bf16 %v90_v23, %v89_v22  ;;  %v92_v29 = vld [vmem:[#allocation5 + $0x58] sm:$0xff]  ;;  %v573_v30 = vpack.c.bf16 %v182_v26, %v181_v25  ;;  %v183_v31 = vld [vmem:[#allocation7 + $0x40] sm:$0xff]  ;;  %v184_v32 = vld [vmem:[#allocation7 + $0x48] sm:$0xff] }
  0x51   :  { %544 = vmatpush3.bf16.msra.mxu0 %v543_v7  ;;  %v555_v33 = vpack.c.bf16 %v92_v29, %v91_v28  ;;  %v93_v34 = vld [vmem:[#allocation5 + $0x60] sm:$0xff]  ;;  %v94_v35 = vld [vmem:[#allocation5 + $0x68] sm:$0xff]  ;;  %v576_v36 = vpack.c.bf16 %v184_v32, %v183_v31  ;;  %v185_v37 = vld [vmem:[#allocation7 + $0x50] sm:$0xff]  ;;  %p717_p8 = pnand %p716_p7, %p710_p4 }
  0x52   :  { %545 = vmatprep.subr.bf16.mxu0 %v745_v0  ;;  %v186_v38 = vld [vmem:[#allocation7 + $0x58] sm:$0xff]  ;;  %v558_v39 = vpack.c.bf16 %v94_v35, %v93_v34  ;;  %v95_v40 = vld [vmem:[#allocation5 + $0x70] sm:$0xff]  ;;  %v187_v43 = vld [vmem:[#allocation7 + $0x60] sm:$0xff] }
  0x53   :  { %568 = vmatpush3.bf16.msra.mxu1 %v567_v18  ;;  %v96_v41 = vld [vmem:[#allocation5 + $0x78] sm:$0xff]  ;;  %v579_v42 = vpack.c.bf16 %v186_v38, %v185_v37  ;;  %v188_v44 = vld [vmem:[#allocation7 + $0x68] sm:$0xff]  ;;  %v189_v48 = vld [vmem:[#allocation7 + $0x70] sm:$0xff] }
  0x54   :  { %569 = vmatprep.subr.bf16.mxu1 %v745_v0  ;;  %v561_v45 = vpack.c.bf16 %v96_v41, %v95_v40  ;;  %v582_v46 = vpack.c.bf16 %v188_v44, %v187_v43  ;;  %v80_v47 = vld [vmem:[#allocation2] sm:$0xff]  ;;  %v269_v51 = vld [vmem:[#allocation8] sm:$0xff]  ;;  %v270_v52 = vld [vmem:[#allocation8 + $0x8] sm:$0xff] }
  0x55   :  { %547 = vmatpush3.bf16.msra.mxu0 %v546_v14  ;;  %v190_v49 = vld [vmem:[#allocation7 + $0x78] sm:$0xff]  ;;  %v271_v53 = vld [vmem:[#allocation8 + $0x10] sm:$0xff]  ;;  %v588_v54 = vpack.c.bf16 %v270_v52, %v269_v51  ;;  %v273_v57 = vld [vmem:[#allocation8 + $0x20] sm:$0xff] }
  0x56   :  { %548 = vmatprep.subr.bf16.mxu0 %v745_v0  ;;  %v585_v50 = vpack.c.bf16 %v190_v49, %v189_v48  ;;  %v272_v55 = vld [vmem:[#allocation8 + $0x18] sm:$0xff]  ;;  %v274_v58 = vld [vmem:[#allocation8 + $0x28] sm:$0xff]  ;;  %v275_v60 = vld [vmem:[#allocation8 + $0x30] sm:$0xff] }
  0x57   :  { %571 = vmatpush3.bf16.msra.mxu1 %v570_v24  ;;  %v591_v56 = vpack.c.bf16 %v272_v55, %v271_v53  ;;  %v594_v59 = vpack.c.bf16 %v274_v58, %v273_v57  ;;  %v276_v61 = vld [vmem:[#allocation8 + $0x38] sm:$0xff]  ;;  %v277_v63 = vld [vmem:[#allocation8 + $0x40] sm:$0xff]  ;;  %v279_v3 = vld [vmem:[#allocation8 + $0x50] sm:$0xff] }
  0x58   :  { %572 = vmatprep.subr.bf16.mxu1 %v745_v0  ;;  %v597_v62 = vpack.c.bf16 %v276_v61, %v275_v60  ;;  %v280_v4 = vld [vmem:[#allocation8 + $0x58] sm:$0xff]  ;;  %v281_v6 = vld [vmem:[#allocation8 + $0x60] sm:$0xff]  ;;  %v282_v7 = vld [vmem:[#allocation8 + $0x68] sm:$0xff] }
  0x59   :  { %550 = vmatpush3.bf16.msra.mxu0 %v549_v21  ;;  %v603_v5 = vpack.c.bf16 %v280_v4, %v279_v3  ;;  %v606_v8 = vpack.c.bf16 %v282_v7, %v281_v6  ;;  %v380_v9 = vld [vmem:[%s899_s2] ss:$0 sm:$0xff]  ;;  %v283_v14 = vld [vmem:[#allocation8 + $0x70] sm:$0xff] }
  0x5a   :  { %551 = vmatprep.subr.bf16.mxu0 %v745_v0  ;;  %v284_v15 = vld [vmem:[#allocation8 + $0x78] sm:$0xff] }
  0x5b   :  { %574 = vmatpush3.bf16.msra.mxu1 %v573_v30  ;;  %v609_v16 = vpack.c.bf16 %v284_v15, %v283_v14  ;;  %v381_v17 = vld [vmem:[%s901_s4] ss:$0 sm:$0xff] }
  0x5c   :  { %575 = vmatprep.subr.bf16.mxu1 %v745_v0  ;;  %v382_v21 = vld [vmem:[%s903_s6] ss:$0 sm:$0xff] }
  0x5d   :  { %553 = vmatpush3.bf16.msra.mxu0 %v552_v27 }
  0x5e   :  { %554 = vmatprep.subr.bf16.mxu0 %v745_v0 }
  0x5f   :  { %577 = vmatpush3.bf16.msra.mxu1 %v576_v36 }
  0x60   :  { %578 = vmatprep.subr.bf16.mxu1 %v745_v0 }
  0x61   :  { %556 = vmatpush3.bf16.msra.mxu0 %v555_v33 }
  0x62   :  { %557 = vmatprep.subr.bf16.mxu0 %v745_v0 }
  0x63   :  { %580 = vmatpush3.bf16.msra.mxu1 %v579_v42 }
  0x64   :  { %581 = vmatprep.subr.bf16.mxu1 %v745_v0 }
  0x65   :  { %559 = vmatpush3.bf16.msra.mxu0 %v558_v39 }
  0x66   :  { %560 = vmatprep.subr.bf16.mxu0 %v745_v0 }
  0x67   :  { %583 = vmatpush3.bf16.msra.mxu1 %v582_v46 }
  0x68   :  { %584 = vmatprep.subr.bf16.mxu1 %v745_v0 }
  0x69   :  { %562 = vmatpush3.bf16.msra.mxu0 %v561_v45 }
  0x6a   :  { %587 = vmatprep.subr.bf16.mxu0 %v745_v0 }
  0x6b   :  { %586 = vmatpush3.bf16.msra.mxu1 %v585_v50 }
  0x6c   :  { %467 = vmatmul.mubr.f32.vlgmr.msra.gmra.mrb[0].mxu0 %v80_v47 }
  0x6d   :  { %536 = vmatprep.mubr.msk.f32.mxu0 %vm746_vm0, %v747_v1  ;;  %589 = vmatpush3.bf16.msra.mxu0 %v588_v54  ;;  %v278_v1 = vld [vmem:[#allocation8 + $0x48] sm:$0xff] }
  0x6e   :  { %590 = vmatprep.subr.bf16.mxu0 %v745_v0  ;;  %v600_v2 = vpack.c.bf16 %v278_v1, %v277_v63 }
  0x71   :  { %592 = vmatpush3.bf16.msra.mxu0 %v591_v56 }
  0x72   :  { %593 = vmatprep.subr.bf16.mxu0 %v745_v0 }
  0x75   :  { %595 = vmatpush3.bf16.msra.mxu0 %v594_v59 }
  0x76   :  { %596 = vmatprep.subr.bf16.mxu0 %v745_v0 }
  0x79   :  { %598 = vmatpush3.bf16.msra.mxu0 %v597_v62 }
  0x7a   :  { %599 = vmatprep.subr.bf16.mxu0 %v745_v0 }
  0x7d   :  { %601 = vmatpush3.bf16.msra.mxu0 %v600_v2 }
  0x7e   :  { %602 = vmatprep.subr.bf16.mxu0 %v745_v0 }
  0x81   :  { %604 = vmatpush3.bf16.msra.mxu0 %v603_v5 }
  0x82   :  { %605 = vmatprep.subr.bf16.mxu0 %v745_v0 }
  0x85   :  { %607 = vmatpush3.bf16.msra.mxu0 %v606_v8 }
  0x86   :  { %608 = vmatprep.subr.bf16.mxu0 %v745_v0 }
  0x89   :  { %610 = vmatpush3.bf16.msra.mxu0 %v609_v16 }
 0x13f   :  { %v170_v10 = vpop.f32.mrb[0].mxu0 }
 0x140   :  { %v171_v11 = vadd.f32 %v380_v9, %v170_v10  ;;  %v468_v12 = vpop.f32.mrb[1].mxu0 }
 0x142   :  { %v174_v13 = vmax.f32 %v171_v11, 0.0 }
 0x144   :  { %502 = vmatmul.mubr.f32.vlgmr.msra.gmra.mrb[0].mxu1 %v174_v13 }
 0x217   :  { %v264_v18 = vpop.f32.mrb[0].mxu1 }
 0x218   :  { %v265_v19 = vadd.f32 %v381_v17, %v264_v18  ;;  %v503_v0 = vpop.f32.mrb[1].mxu1 }
 0x21a   :  { %v268_v20 = vmax.f32 %v265_v19, 0.0 }
 0x21c   :  { %537 = vmatmul.mubr.f32.vlgmr.msra.gmra.mrb[2].mxu0 %v268_v20 }
 0x2ef   :  { %v358_v22 = vpop.f32.mrb[2].mxu0 }
 0x2f0   :  { %v359_v23 = vadd.f32 %v382_v21, %v358_v22  ;;  %v538_v24 = vpop.f32.mrb[3].mxu0 }
 0x2f2   :  { %362 = vst [vmem:[#allocation10] sm:$0xff] %v359_v23 }
 0x2f3   :  { %720 = shalt.err (!%p717_p8)
}
 0x2f4   :  { %s721_s9 = scalar_lea.hbm %s904_s7, 128 }
 0x2f5   :  { %p722_p9 = scmp.ne.s32.totalorder %s904_s7, %s721_s9  ;;  %p725_p10 = scmp.lt.u32.totalorder %s721_s9, %s904_s7 }
 0x2f7   :  { %p727_p11 = pnand %p725_p10, %p722_p9 }
 0x2f9   :  { %730 = shalt.err (!%p727_p11)
}
 0x2fa   :  { %372 = dma.vmem_to_hbm [thread:$0]  %s370_s29, 128, %s904_s7, [#allocation4]  }
 0x2fb   :  { %737 = dma.done.wait [#allocation4], 128  }
 0x2fc   :  { %738 = vsyncadd [#allocation4], 4294967168 }
 0x2fd   :  { %376 = vsyncpa [#allocation3], 1 }
 0x2fe   :  { %377 = vsyncpa [#allocation6], 1 }
 0x2ff   :  { %378 = vsyncpa [#allocation9], 1 }
 0x300   :  { %379 = vsyncpa [#allocation4], 1 }

// kernel: tpu_custom_call.1
= control target key start
LH: loop header
LB: loop body
LE: loop exit
PB: predicated region body
PF: predicated region fallthrough
CT: control target
= control target key end

     0   :  { %12 = vsyncpa [#allocation3], 0  ;;  %s897_s0 = inlined_call_operand.hbm [shape: f32[8,128], index: 0, kind: input, shape index: {}]   ;;  %s898_s1 = inlined_call_operand.hbm [shape: f32[128,128], index: 1, kind: input, shape index: {}]   ;;  %s899_s2 = inlined_call_operand.vmem [shape: f32[1,128], index: 2, kind: input, shape index: {}]   ;;  %s900_s3 = inlined_call_operand.hbm [shape: f32[128,128], index: 3, kind: input, shape index: {}]   ;;  %s901_s4 = inlined_call_operand.vmem [shape: f32[1,128], index: 4, kind: input, shape index: {}]   ;;  %s902_s5 = inlined_call_operand.hbm [shape: f32[128,128], index: 5, kind: input, shape index: {}]   ;;  %s903_s6 = inlined_call_operand.vmem [shape: f32[1,128], index: 6, kind: input, shape index: {}]   ;;  %s904_s7 = inlined_call_operand.hbm [shape: f32[8,128], index: 7, kind: output, shape index: {}]  }
   0x1   :  { %13 = vsyncpa [#allocation6], 0 }
   0x2   :  { %14 = vsyncpa [#allocation9], 0 }
   0x3   :  { %15 = vsyncpa [#allocation4], 0  ;;  %s739_s24 = smov [#allocation5]   ;;  %s621_s28 = scalar_lea.hbm %s898_s1, 2048 }
   0x4   :  { %s31_s25 = sshll.u32 %s739_s24, 4  ;;  %p622_p0 = scmp.ne.s32.totalorder %s898_s1, %s621_s28  ;;  %s32_s25 = int_to_ptr.vmem [resolvable:$true] %s31_s25 }
   0x5   :  { %p625_p1 = scmp.lt.u32.totalorder %s621_s28, %s898_s1 }
   0x7   :  { %p627_p2 = pnand %p625_p1, %p622_p0 }
   0x9   :  { %630 = shalt.err (!%p627_p2)
}
   0xa   :  { %s631_s10 = scalar_lea.vmem %s32_s25, 2048  ;;  %p636_p4 = scmp.lt.s32.totalorder %s32_s25, %s32_s25 }
   0xb   :  { %p632_p3 = scmp.ne.s32.totalorder %s32_s25, %s631_s10  ;;  %p637_p5 = scmp.lt.s32.totalorder %s631_s10, %s631_s10 }
   0xd   :  { %p638_p6 = por %p637_p5, %p636_p4 }
   0xf   :  { %p639_p7 = pnand %p638_p6, %p632_p3 }
  0x11   :  { %642 = shalt.err (!%p639_p7)
}
  0x12   :  { %s740_s11 = smov 128   ;;  %s741_s12 = smov 8  }
  0x13   :  { %37 = dma.hbm_to_vmem [thread:$0]  %s898_s1, 2048, %s32_s25, [#allocation6], %s740_s11, %s740_s11, %s741_s12  }
  0x14   :  { %s742_s15 = smov [#allocation2]   ;;  %s743_s17 = smov [#allocation7]  }
  0x15   :  { %s22_s16 = sshll.u32 %s742_s15, 4  ;;  %s45_s18 = sshll.u32 %s743_s17, 4  ;;  %s23_s16 = int_to_ptr.vmem [resolvable:$true] %s22_s16  ;;  %s46_s18 = int_to_ptr.vmem [resolvable:$true] %s45_s18 }
  0x16   :  { %s643_s21 = scalar_lea.hbm %s897_s0, 128 }
  0x17   :  { %p644_p8 = scmp.ne.s32.totalorder %s897_s0, %s643_s21  ;;  %p647_p9 = scmp.lt.u32.totalorder %s643_s21, %s897_s0 }
  0x19   :  { %p649_p10 = pnand %p647_p9, %p644_p8 }
  0x1b   :  { %652 = shalt.err (!%p649_p10)
}
  0x1c   :  { %s653_s1 = scalar_lea.vmem %s23_s16, 128  ;;  %p658_p12 = scmp.lt.s32.totalorder %s23_s16, %s23_s16 }
  0x1d   :  { %p654_p11 = scmp.ne.s32.totalorder %s23_s16, %s653_s1  ;;  %p659_p13 = scmp.lt.s32.totalorder %s653_s1, %s653_s1 }
  0x1f   :  { %p660_p0 = por %p659_p13, %p658_p12 }
  0x21   :  { %p661_p1 = pnand %p660_p0, %p654_p11 }
  0x23   :  { %664 = shalt.err (!%p661_p1)
}
  0x24   :  { %25 = dma.hbm_to_vmem [thread:$0]  %s897_s0, 128, %s23_s16, [#allocation3]  }
  0x25   :  { %s665_s30 = scalar_lea.hbm %s900_s3, 2048 }
  0x26   :  { %p666_p2 = scmp.ne.s32.totalorder %s900_s3, %s665_s30  ;;  %p669_p3 = scmp.lt.u32.totalorder %s665_s30, %s900_s3 }
  0x28   :  { %p671_p4 = pnand %p669_p3, %p666_p2 }
  0x2a   :  { %674 = shalt.err (!%p671_p4)
}
  0x2b   :  { %s675_s14 = scalar_lea.vmem %s46_s18, 2048  ;;  %p680_p6 = scmp.lt.s32.totalorder %s46_s18, %s46_s18 }
  0x2c   :  { %p676_p5 = scmp.ne.s32.totalorder %s46_s18, %s675_s14  ;;  %p681_p7 = scmp.lt.s32.totalorder %s675_s14, %s675_s14 }
  0x2e   :  { %p682_p8 = por %p681_p7, %p680_p6 }
  0x30   :  { %p683_p9 = pnand %p682_p8, %p676_p5 }
  0x32   :  { %686 = shalt.err (!%p683_p9)
}
  0x33   :  { %51 = dma.hbm_to_vmem [thread:$0]  %s900_s3, 2048, %s46_s18, [#allocation6], %s740_s11, %s740_s11, %s741_s12  }
  0x34   :  { %s744_s16 = smov [#allocation8]   ;;  %s687_s21 = scalar_lea.hbm %s902_s5, 2048 }
  0x35   :  { %s59_s17 = sshll.u32 %s744_s16, 4  ;;  %p688_p10 = scmp.ne.s32.totalorder %s902_s5, %s687_s21  ;;  %s60_s17 = int_to_ptr.vmem [resolvable:$true] %s59_s17 }
  0x36   :  { %p691_p11 = scmp.lt.u32.totalorder %s687_s21, %s902_s5 }
  0x38   :  { %p693_p12 = pnand %p691_p11, %p688_p10 }
  0x3a   :  { %696 = shalt.err (!%p693_p12)
}
  0x3b   :  { %s697_s1 = scalar_lea.vmem %s60_s17, 2048  ;;  %p702_p0 = scmp.lt.s32.totalorder %s60_s17, %s60_s17 }
  0x3c   :  { %p698_p13 = scmp.ne.s32.totalorder %s60_s17, %s697_s1  ;;  %p703_p1 = scmp.lt.s32.totalorder %s697_s1, %s697_s1 }
  0x3e   :  { %p704_p2 = por %p703_p1, %p702_p0 }
  0x40   :  { %p705_p3 = pnand %p704_p2, %p698_p13 }
  0x42   :  { %708 = shalt.err (!%p705_p3)
}
  0x43   :  { %65 = dma.hbm_to_vmem [thread:$0]  %s902_s5, 2048, %s60_s17, [#allocation9], %s740_s11, %s740_s11, %s741_s12  }
  0x44   :  { %731 = dma.done.wait [#allocation3], 128  }
  0x45   :  { %732 = vsyncadd [#allocation3], 4294967168 }
  0x46   :  { %733 = dma.done.wait [#allocation6], 4096  }
  0x47   :  { %734 = vsyncadd [#allocation6], 4294963200 }
  0x48   :  { %735 = dma.done.wait [#allocation9], 2048  }
  0x49   :  { %736 = vsyncadd [#allocation9], 4294965248  ;;  %v745_v0 = vmov 0.0|0.0   ;;  %vm746_vm0 = vmmov 0   ;;  %v747_v1 = vmov 0.0   ;;  %v81_v2 = vld [vmem:[#allocation5] sm:$0xff] }
  0x4a   :  { %539 = vmatprep.subr.bf16.mxu0 %v745_v0  ;;  %466 = vmatprep.mubr.msk.f32.mxu0 %vm746_vm0, %v747_v1  ;;  %v82_v3 = vld [vmem:[#allocation5 + $0x8] sm:$0xff]  ;;  %v83_v4 = vld [vmem:[#allocation5 + $0x10] sm:$0xff]  ;;  %v84_v6 = vld [vmem:[#allocation5 + $0x18] sm:$0xff]  ;;  %s748_s28 = smov [#allocation10]  }
  0x4b   :  { %563 = vmatprep.subr.bf16.mxu1 %v745_v0  ;;  %501 = vmatprep.mubr.msk.f32.mxu1 %vm746_vm0, %v747_v1  ;;  %v540_v5 = vpack.c.bf16 %v82_v3, %v81_v2  ;;  %v543_v7 = vpack.c.bf16 %v84_v6, %v83_v4  ;;  %v85_v8 = vld [vmem:[#allocation5 + $0x20] sm:$0xff]  ;;  %v86_v9 = vld [vmem:[#allocation5 + $0x28] sm:$0xff]  ;;  %v177_v12 = vld [vmem:[#allocation7 + $0x10] sm:$0xff]  ;;  %s369_s29 = sshll.u32 %s748_s28, 4  ;;  %s370_s29 = int_to_ptr.vmem [resolvable:$true] %s369_s29 }
  0x4c   :  { %v175_v10 = vld [vmem:[#allocation7] sm:$0xff]  ;;  %v176_v11 = vld [vmem:[#allocation7 + $0x8] sm:$0xff]  ;;  %v178_v13 = vld [vmem:[#allocation7 + $0x18] sm:$0xff]  ;;  %v546_v14 = vpack.c.bf16 %v86_v9, %v85_v8  ;;  %s709_s30 = scalar_lea.vmem %s370_s29, 128  ;;  %p714_p5 = scmp.lt.s32.totalorder %s370_s29, %s370_s29 }
  0x4d   :  { %541 = vmatpush3.bf16.msra.mxu0 %v540_v5  ;;  %v564_v15 = vpack.c.bf16 %v176_v11, %v175_v10  ;;  %v87_v16 = vld [vmem:[#allocation5 + $0x30] sm:$0xff]  ;;  %v88_v17 = vld [vmem:[#allocation5 + $0x38] sm:$0xff]  ;;  %v567_v18 = vpack.c.bf16 %v178_v13, %v177_v12  ;;  %v179_v19 = vld [vmem:[#allocation7 + $0x20] sm:$0xff]  ;;  %p710_p4 = scmp.ne.s32.totalorder %s370_s29, %s709_s30  ;;  %p715_p6 = scmp.lt.s32.totalorder %s709_s30, %s709_s30 }
  0x4e   :  { %542 = vmatprep.subr.bf16.mxu0 %v745_v0  ;;  %v180_v20 = vld [vmem:[#allocation7 + $0x28] sm:$0xff]  ;;  %v549_v21 = vpack.c.bf16 %v88_v17, %v87_v16  ;;  %v89_v22 = vld [vmem:[#allocation5 + $0x40] sm:$0xff]  ;;  %v181_v25 = vld [vmem:[#allocation7 + $0x30] sm:$0xff] }
  0x4f   :  { %565 = vmatpush3.bf16.msra.mxu1 %v564_v15  ;;  %v90_v23 = vld [vmem:[#allocation5 + $0x48] sm:$0xff]  ;;  %v570_v24 = vpack.c.bf16 %v180_v20, %v179_v19  ;;  %v182_v26 = vld [vmem:[#allocation7 + $0x38] sm:$0xff]  ;;  %v91_v28 = vld [vmem:[#allocation5 + $0x50] sm:$0xff]  ;;  %p716_p7 = por %p715_p6, %p714_p5 }
  0x50   :  { %566 = vmatprep.subr.bf16.mxu1 %v745_v0  ;;  %v552_v27 = vpack.c.bf16 %v90_v23, %v89_v22  ;;  %v92_v29 = vld [vmem:[#allocation5 + $0x58] sm:$0xff]  ;;  %v573_v30 = vpack.c.bf16 %v182_v26, %v181_v25  ;;  %v183_v31 = vld [vmem:[#allocation7 + $0x40] sm:$0xff]  ;;  %v184_v32 = vld [vmem:[#allocation7 + $0x48] sm:$0xff] }
  0x51   :  { %544 = vmatpush3.bf16.msra.mxu0 %v543_v7  ;;  %v555_v33 = vpack.c.bf16 %v92_v29, %v91_v28  ;;  %v93_v34 = vld [vmem:[#allocation5 + $0x60] sm:$0xff]  ;;  %v94_v35 = vld [vmem:[#allocation5 + $0x68] sm:$0xff]  ;;  %v576_v36 = vpack.c.bf16 %v184_v32, %v183_v31  ;;  %v185_v37 = vld [vmem:[#allocation7 + $0x50] sm:$0xff]  ;;  %p717_p8 = pnand %p716_p7, %p710_p4 }
  0x52   :  { %545 = vmatprep.subr.bf16.mxu0 %v745_v0  ;;  %v186_v38 = vld [vmem:[#allocation7 + $0x58] sm:$0xff]  ;;  %v558_v39 = vpack.c.bf16 %v94_v35, %v93_v34  ;;  %v95_v40 = vld [vmem:[#allocation5 + $0x70] sm:$0xff]  ;;  %v187_v43 = vld [vmem:[#allocation7 + $0x60] sm:$0xff] }
  0x53   :  { %568 = vmatpush3.bf16.msra.mxu1 %v567_v18  ;;  %v96_v41 = vld [vmem:[#allocation5 + $0x78] sm:$0xff]  ;;  %v579_v42 = vpack.c.bf16 %v186_v38, %v185_v37  ;;  %v188_v44 = vld [vmem:[#allocation7 + $0x68] sm:$0xff]  ;;  %v189_v48 = vld [vmem:[#allocation7 + $0x70] sm:$0xff] }
  0x54   :  { %569 = vmatprep.subr.bf16.mxu1 %v745_v0  ;;  %v561_v45 = vpack.c.bf16 %v96_v41, %v95_v40  ;;  %v582_v46 = vpack.c.bf16 %v188_v44, %v187_v43  ;;  %v80_v47 = vld [vmem:[#allocation2] sm:$0xff]  ;;  %v269_v51 = vld [vmem:[#allocation8] sm:$0xff]  ;;  %v270_v52 = vld [vmem:[#allocation8 + $0x8] sm:$0xff] }
  0x55   :  { %547 = vmatpush3.bf16.msra.mxu0 %v546_v14  ;;  %v190_v49 = vld [vmem:[#allocation7 + $0x78] sm:$0xff]  ;;  %v271_v53 = vld [vmem:[#allocation8 + $0x10] sm:$0xff]  ;;  %v588_v54 = vpack.c.bf16 %v270_v52, %v269_v51  ;;  %v273_v57 = vld [vmem:[#allocation8 + $0x20] sm:$0xff] }
  0x56   :  { %548 = vmatprep.subr.bf16.mxu0 %v745_v0  ;;  %v585_v50 = vpack.c.bf16 %v190_v49, %v189_v48  ;;  %v272_v55 = vld [vmem:[#allocation8 + $0x18] sm:$0xff]  ;;  %v274_v58 = vld [vmem:[#allocation8 + $0x28] sm:$0xff]  ;;  %v275_v60 = vld [vmem:[#allocation8 + $0x30] sm:$0xff] }
  0x57   :  { %571 = vmatpush3.bf16.msra.mxu1 %v570_v24  ;;  %v591_v56 = vpack.c.bf16 %v272_v55, %v271_v53  ;;  %v594_v59 = vpack.c.bf16 %v274_v58, %v273_v57  ;;  %v276_v61 = vld [vmem:[#allocation8 + $0x38] sm:$0xff]  ;;  %v277_v63 = vld [vmem:[#allocation8 + $0x40] sm:$0xff]  ;;  %v279_v3 = vld [vmem:[#allocation8 + $0x50] sm:$0xff] }
  0x58   :  { %572 = vmatprep.subr.bf16.mxu1 %v745_v0  ;;  %v597_v62 = vpack.c.bf16 %v276_v61, %v275_v60  ;;  %v280_v4 = vld [vmem:[#allocation8 + $0x58] sm:$0xff]  ;;  %v281_v6 = vld [vmem:[#allocation8 + $0x60] sm:$0xff]  ;;  %v282_v7 = vld [vmem:[#allocation8 + $0x68] sm:$0xff] }
  0x59   :  { %550 = vmatpush3.bf16.msra.mxu0 %v549_v21  ;;  %v603_v5 = vpack.c.bf16 %v280_v4, %v279_v3  ;;  %v606_v8 = vpack.c.bf16 %v282_v7, %v281_v6  ;;  %v380_v9 = vld [vmem:[%s899_s2] ss:$0 sm:$0xff]  ;;  %v283_v14 = vld [vmem:[#allocation8 + $0x70] sm:$0xff] }
  0x5a   :  { %551 = vmatprep.subr.bf16.mxu0 %v745_v0  ;;  %v284_v15 = vld [vmem:[#allocation8 + $0x78] sm:$0xff] }
  0x5b   :  { %574 = vmatpush3.bf16.msra.mxu1 %v573_v30  ;;  %v609_v16 = vpack.c.bf16 %v284_v15, %v283_v14  ;;  %v381_v17 = vld [vmem:[%s901_s4] ss:$0 sm:$0xff] }
  0x5c   :  { %575 = vmatprep.subr.bf16.mxu1 %v745_v0  ;;  %v382_v21 = vld [vmem:[%s903_s6] ss:$0 sm:$0xff] }
  0x5d   :  { %553 = vmatpush3.bf16.msra.mxu0 %v552_v27 }
  0x5e   :  { %554 = vmatprep.subr.bf16.mxu0 %v745_v0 }
  0x5f   :  { %577 = vmatpush3.bf16.msra.mxu1 %v576_v36 }
  0x60   :  { %578 = vmatprep.subr.bf16.mxu1 %v745_v0 }
  0x61   :  { %556 = vmatpush3.bf16.msra.mxu0 %v555_v33 }
  0x62   :  { %557 = vmatprep.subr.bf16.mxu0 %v745_v0 }
  0x63   :  { %580 = vmatpush3.bf16.msra.mxu1 %v579_v42 }
  0x64   :  { %581 = vmatprep.subr.bf16.mxu1 %v745_v0 }
  0x65   :  { %559 = vmatpush3.bf16.msra.mxu0 %v558_v39 }
  0x66   :  { %560 = vmatprep.subr.bf16.mxu0 %v745_v0 }
  0x67   :  { %583 = vmatpush3.bf16.msra.mxu1 %v582_v46 }
  0x68   :  { %584 = vmatprep.subr.bf16.mxu1 %v745_v0 }
  0x69   :  { %562 = vmatpush3.bf16.msra.mxu0 %v561_v45 }
  0x6a   :  { %587 = vmatprep.subr.bf16.mxu0 %v745_v0 }
  0x6b   :  { %586 = vmatpush3.bf16.msra.mxu1 %v585_v50 }
  0x6c   :  { %467 = vmatmul.mubr.f32.vlgmr.msra.gmra.mrb[0].mxu0 %v80_v47 }
  0x6d   :  { %536 = vmatprep.mubr.msk.f32.mxu0 %vm746_vm0, %v747_v1  ;;  %589 = vmatpush3.bf16.msra.mxu0 %v588_v54  ;;  %v278_v1 = vld [vmem:[#allocation8 + $0x48] sm:$0xff] }
  0x6e   :  { %590 = vmatprep.subr.bf16.mxu0 %v745_v0  ;;  %v600_v2 = vpack.c.bf16 %v278_v1, %v277_v63 }
  0x71   :  { %592 = vmatpush3.bf16.msra.mxu0 %v591_v56 }
  0x72   :  { %593 = vmatprep.subr.bf16.mxu0 %v745_v0 }
  0x75   :  { %595 = vmatpush3.bf16.msra.mxu0 %v594_v59 }
  0x76   :  { %596 = vmatprep.subr.bf16.mxu0 %v745_v0 }
  0x79   :  { %598 = vmatpush3.bf16.msra.mxu0 %v597_v62 }
  0x7a   :  { %599 = vmatprep.subr.bf16.mxu0 %v745_v0 }
  0x7d   :  { %601 = vmatpush3.bf16.msra.mxu0 %v600_v2 }
  0x7e   :  { %602 = vmatprep.subr.bf16.mxu0 %v745_v0 }
  0x81   :  { %604 = vmatpush3.bf16.msra.mxu0 %v603_v5 }
  0x82   :  { %605 = vmatprep.subr.bf16.mxu0 %v745_v0 }
  0x85   :  { %607 = vmatpush3.bf16.msra.mxu0 %v606_v8 }
  0x86   :  { %608 = vmatprep.subr.bf16.mxu0 %v745_v0 }
  0x89   :  { %610 = vmatpush3.bf16.msra.mxu0 %v609_v16 }
 0x13f   :  { %v170_v10 = vpop.f32.mrb[0].mxu0 }
 0x140   :  { %v171_v11 = vadd.f32 %v380_v9, %v170_v10  ;;  %v468_v12 = vpop.f32.mrb[1].mxu0 }
 0x142   :  { %v174_v13 = vmax.f32 %v171_v11, 0.0 }
 0x144   :  { %502 = vmatmul.mubr.f32.vlgmr.msra.gmra.mrb[0].mxu1 %v174_v13 }
 0x217   :  { %v264_v18 = vpop.f32.mrb[0].mxu1 }
 0x218   :  { %v265_v19 = vadd.f32 %v381_v17, %v264_v18  ;;  %v503_v0 = vpop.f32.mrb[1].mxu1 }
 0x21a   :  { %v268_v20 = vmax.f32 %v265_v19, 0.0 }
 0x21c   :  { %537 = vmatmul.mubr.f32.vlgmr.msra.gmra.mrb[2].mxu0 %v268_v20 }
 0x2ef   :  { %v358_v22 = vpop.f32.mrb[2].mxu0 }
 0x2f0   :  { %v359_v23 = vadd.f32 %v382_v21, %v358_v22  ;;  %v538_v24 = vpop.f32.mrb[3].mxu0 }
 0x2f2   :  { %362 = vst [vmem:[#allocation10] sm:$0xff] %v359_v23 }
 0x2f3   :  { %720 = shalt.err (!%p717_p8)
}
 0x2f4   :  { %s721_s9 = scalar_lea.hbm %s904_s7, 128 }
 0x2f5   :  { %p722_p9 = scmp.ne.s32.totalorder %s904_s7, %s721_s9  ;;  %p725_p10 = scmp.lt.u32.totalorder %s721_s9, %s904_s7 }
 0x2f7   :  { %p727_p11 = pnand %p725_p10, %p722_p9 }
 0x2f9   :  { %730 = shalt.err (!%p727_p11)
}
 0x2fa   :  { %372 = dma.vmem_to_hbm [thread:$0]  %s370_s29, 128, %s904_s7, [#allocation4]  }
 0x2fb   :  { %737 = dma.done.wait [#allocation4], 128  }
 0x2fc   :  { %738 = vsyncadd [#allocation4], 4294967168 }
 0x2fd   :  { %376 = vsyncpa [#allocation3], 1 }
 0x2fe   :  { %377 = vsyncpa [#allocation6], 1 }
 0x2ff   :  { %378 = vsyncpa [#allocation9], 1 }
 0x300   :  { %379 = vsyncpa [#allocation4], 1 }

// kernel: tpu_custom_call.1
= control target key start
LH: loop header
LB: loop body
LE: loop exit
PB: predicated region body
PF: predicated region fallthrough
CT: control target
= control target key end

     0   :  { %8 = vsyncpa [#allocation4], 0  ;;  %s397_s0 = inlined_call_operand.hbm [shape: f32[8,128], index: 0, kind: input, shape index: {}]   ;;  %s398_s1 = inlined_call_operand.hbm [shape: f32[128,128], index: 1, kind: input, shape index: {}]   ;;  %s399_s2 = inlined_call_operand.vmem [shape: f32[1,128], index: 2, kind: input, shape index: {}]   ;;  %s400_s3 = inlined_call_operand.hbm [shape: f32[8,128], index: 3, kind: output, shape index: {}]  }
   0x1   :  { %9 = vsyncpa [#allocation7], 0 }
   0x2   :  { %10 = vsyncpa [#allocation5], 0  ;;  %s323_s12 = smov [#allocation3]   ;;  %s324_s14 = smov [#allocation6]  }
   0x3   :  { %s17_s13 = sshll.u32 %s323_s12, 4  ;;  %s26_s15 = sshll.u32 %s324_s14, 4  ;;  %s18_s13 = int_to_ptr.vmem [resolvable:$true] %s17_s13  ;;  %s351_s15 = int_to_ptr.vmem [resolvable:$true] %s26_s15 }
   0x4   :  { %s251_s18 = scalar_lea.hbm %s397_s0, 128 }
   0x5   :  { %p252_p0 = scmp.ne.s32.totalorder %s397_s0, %s251_s18  ;;  %p255_p1 = scmp.lt.u32.totalorder %s251_s18, %s397_s0 }
   0x7   :  { %p257_p2 = pnand %p255_p1, %p252_p0 }
   0x9   :  { %260 = shalt.err (!%p257_p2)
}
   0xa   :  { %s261_s23 = scalar_lea.vmem %s18_s13, 128  ;;  %p266_p4 = scmp.lt.s32.totalorder %s18_s13, %s18_s13 }
   0xb   :  { %p262_p3 = scmp.ne.s32.totalorder %s18_s13, %s261_s23  ;;  %p267_p5 = scmp.lt.s32.totalorder %s261_s23, %s261_s23 }
   0xd   :  { %p268_p6 = por %p267_p5, %p266_p4 }
   0xf   :  { %p269_p7 = pnand %p268_p6, %p262_p3 }
  0x11   :  { %272 = shalt.err (!%p269_p7)
}
  0x12   :  { %20 = dma.hbm_to_vmem [thread:$0]  %s397_s0, 128, %s18_s13, [#allocation4]  }
  0x13   :  { %s273_s28 = scalar_lea.hbm %s398_s1, 2048 }
  0x14   :  { %p274_p8 = scmp.ne.s32.totalorder %s398_s1, %s273_s28  ;;  %p277_p9 = scmp.lt.u32.totalorder %s273_s28, %s398_s1 }
  0x16   :  { %p279_p10 = pnand %p277_p9, %p274_p8 }
  0x18   :  { %282 = shalt.err (!%p279_p10)
}
  0x19   :  { %s283_s6 = scalar_lea.vmem %s351_s15, 2048  ;;  %p288_p12 = scmp.lt.s32.totalorder %s351_s15, %s351_s15 }
  0x1a   :  { %p284_p11 = scmp.ne.s32.totalorder %s351_s15, %s283_s6  ;;  %p289_p13 = scmp.lt.s32.totalorder %s283_s6, %s283_s6 }
  0x1c   :  { %p290_p0 = por %p289_p13, %p288_p12 }
  0x1e   :  { %p291_p1 = pnand %p290_p0, %p284_p11 }
  0x20   :  { %294 = shalt.err (!%p291_p1)
}
  0x21   :  { %s325_s0 = smov 128   ;;  %s326_s7 = smov 8  }
  0x22   :  { %32 = dma.hbm_to_vmem [thread:$0]  %s398_s1, 2048, %s351_s15, [#allocation7], %s325_s0, %s325_s0, %s326_s7  }
  0x23   :  { %317 = dma.done.wait [#allocation4], 128  }
  0x24   :  { %318 = vsyncadd [#allocation4], 4294967168 }
  0x25   :  { %319 = dma.done.wait [#allocation7], 2048  }
  0x26   :  { %320 = vsyncadd [#allocation7], 4294965248  ;;  %v327_v0 = vmov 0.0|0.0   ;;  %vm328_vm0 = vmmov 0   ;;  %v329_v1 = vmov 0.0   ;;  %v48_v2 = vld [vmem:[#allocation6] sm:$0xff] }
  0x27   :  { %219 = vmatprep.subr.bf16.mxu0 %v327_v0  ;;  %216 = vmatprep.mubr.msk.f32.mxu0 %vm328_vm0, %v329_v1  ;;  %v49_v3 = vld [vmem:[#allocation6 + $0x8] sm:$0xff]  ;;  %v50_v4 = vld [vmem:[#allocation6 + $0x10] sm:$0xff]  ;;  %v51_v6 = vld [vmem:[#allocation6 + $0x18] sm:$0xff]  ;;  %s330_s11 = smov [#allocation8]  }
  0x28   :  { %v220_v5 = vpack.c.bf16 %v49_v3, %v48_v2  ;;  %v223_v7 = vpack.c.bf16 %v51_v6, %v50_v4  ;;  %v52_v8 = vld [vmem:[#allocation6 + $0x20] sm:$0xff]  ;;  %v53_v9 = vld [vmem:[#allocation6 + $0x28] sm:$0xff]  ;;  %v54_v11 = vld [vmem:[#allocation6 + $0x30] sm:$0xff]  ;;  %s156_s12 = sshll.u32 %s330_s11, 4  ;;  %s157_s12 = int_to_ptr.vmem [resolvable:$true] %s156_s12 }
  0x29   :  { %v226_v10 = vpack.c.bf16 %v53_v9, %v52_v8  ;;  %v55_v12 = vld [vmem:[#allocation6 + $0x38] sm:$0xff]  ;;  %v56_v14 = vld [vmem:[#allocation6 + $0x40] sm:$0xff]  ;;  %v57_v15 = vld [vmem:[#allocation6 + $0x48] sm:$0xff]  ;;  %s295_s13 = scalar_lea.vmem %s157_s12, 128  ;;  %p300_p3 = scmp.lt.s32.totalorder %s157_s12, %s157_s12 }
  0x2a   :  { %221 = vmatpush3.bf16.msra.mxu0 %v220_v5  ;;  %v229_v13 = vpack.c.bf16 %v55_v12, %v54_v11  ;;  %v232_v16 = vpack.c.bf16 %v57_v15, %v56_v14  ;;  %v58_v17 = vld [vmem:[#allocation6 + $0x50] sm:$0xff]  ;;  %v59_v18 = vld [vmem:[#allocation6 + $0x58] sm:$0xff]  ;;  %v60_v20 = vld [vmem:[#allocation6 + $0x60] sm:$0xff]  ;;  %p296_p2 = scmp.ne.s32.totalorder %s157_s12, %s295_s13  ;;  %p301_p4 = scmp.lt.s32.totalorder %s295_s13, %s295_s13 }
  0x2b   :  { %222 = vmatprep.subr.bf16.mxu0 %v327_v0  ;;  %v235_v19 = vpack.c.bf16 %v59_v18, %v58_v17  ;;  %v61_v21 = vld [vmem:[#allocation6 + $0x68] sm:$0xff]  ;;  %v62_v23 = vld [vmem:[#allocation6 + $0x70] sm:$0xff]  ;;  %v63_v24 = vld [vmem:[#allocation6 + $0x78] sm:$0xff] }
  0x2c   :  { %v238_v22 = vpack.c.bf16 %v61_v21, %v60_v20  ;;  %v241_v25 = vpack.c.bf16 %v63_v24, %v62_v23  ;;  %v47_v26 = vld [vmem:[#allocation3] sm:$0xff]  ;;  %p302_p5 = por %p301_p4, %p300_p3 }
  0x2d   :  { %v166_v27 = vld [vmem:[%s399_s2] ss:$0 sm:$0xff] }
  0x2e   :  { %224 = vmatpush3.bf16.msra.mxu0 %v223_v7  ;;  %p303_p6 = pnand %p302_p5, %p296_p2 }
  0x2f   :  { %225 = vmatprep.subr.bf16.mxu0 %v327_v0 }
  0x32   :  { %227 = vmatpush3.bf16.msra.mxu0 %v226_v10 }
  0x33   :  { %228 = vmatprep.subr.bf16.mxu0 %v327_v0 }
  0x36   :  { %230 = vmatpush3.bf16.msra.mxu0 %v229_v13 }
  0x37   :  { %231 = vmatprep.subr.bf16.mxu0 %v327_v0 }
  0x3a   :  { %233 = vmatpush3.bf16.msra.mxu0 %v232_v16 }
  0x3b   :  { %234 = vmatprep.subr.bf16.mxu0 %v327_v0 }
  0x3e   :  { %236 = vmatpush3.bf16.msra.mxu0 %v235_v19 }
  0x3f   :  { %237 = vmatprep.subr.bf16.mxu0 %v327_v0 }
  0x42   :  { %239 = vmatpush3.bf16.msra.mxu0 %v238_v22 }
  0x43   :  { %240 = vmatprep.subr.bf16.mxu0 %v327_v0 }
  0x46   :  { %242 = vmatpush3.bf16.msra.mxu0 %v241_v25 }
  0x49   :  { %217 = vmatmul.mubr.f32.vlgmr.msra.gmra.mrb[0].mxu0 %v47_v26 }
 0x11c   :  { %v130_v28 = vpop.f32.mrb[0].mxu0 }
 0x11d   :  { %v147_v29 = vadd.f32 %v166_v27, %v130_v28  ;;  %v218_v30 = vpop.f32.mrb[1].mxu0 }
 0x11f   :  { %v148_v31 = vmax.f32 %v147_v29, 0.0 }
 0x121   :  { %149 = vst [vmem:[#allocation8] sm:$0xff] %v148_v31 }
 0x122   :  { %306 = shalt.err (!%p303_p6)
}
 0x123   :  { %s307_s16 = scalar_lea.hbm %s400_s3, 128 }
 0x124   :  { %p308_p7 = scmp.ne.s32.totalorder %s400_s3, %s307_s16  ;;  %p311_p8 = scmp.lt.u32.totalorder %s307_s16, %s400_s3 }
 0x126   :  { %p313_p9 = pnand %p311_p8, %p308_p7 }
 0x128   :  { %316 = shalt.err (!%p313_p9)
}
 0x129   :  { %159 = dma.vmem_to_hbm [thread:$0]  %s157_s12, 128, %s400_s3, [#allocation5]  }
 0x12a   :  { %321 = dma.done.wait [#allocation5], 128  }
 0x12b   :  { %322 = vsyncadd [#allocation5], 4294967168 }
 0x12c   :  { %163 = vsyncpa [#allocation4], 1 }
 0x12d   :  { %164 = vsyncpa [#allocation7], 1 }
 0x12e   :  { %165 = vsyncpa [#allocation5], 1 }

</bundles_post_ra>
